<compile_context>
chip_gen: v5e
topology: v5e:2x2
jax: 0.10.0
libtpu: 0.0.40
codegen_flags: <defaults>
</compile_context>

<pallas_src>
import functools
import math

import jax
import jax.numpy as jnp
from jax.experimental import pallas as pl
from jax.experimental.pallas import tpu as pltpu


_VMEM_CAP = 48 << 20  # stay well under v7x's 64 MiB/TC; fine on v5e/v6e too.


# ---------------------------------------------------------------------------
# helpers
# ---------------------------------------------------------------------------
def _round_up(x, m):
    return (x + m - 1) // m * m


def _pick_col_tile(n, max_t=512):
    """Largest multiple-of-128 divisor of n that is <= max_t; else full n."""
    if n % 128 == 0:
        for t in (512, 384, 256, 128):
            if t <= max_t and n % t == 0:
                return t
    return n


def _pick_row_tile(m, tm_max=512):
    """Row tile (multiple of 8) chosen so padding waste stays small."""
    m8 = _round_up(m, 8)
    if m8 <= tm_max:
        return m8
    n_tiles = -(-m // tm_max)                 # ceil(m / tm_max)
    return _round_up(-(-m // n_tiles), 8)     # ceil(m / n_tiles), 8-aligned


# ---------------------------------------------------------------------------
# Linear: y = x @ W + b   (M/N parallel tiles, K reduction axis + accumulator)
# ---------------------------------------------------------------------------
def _linear_kernel(x_ref, w_ref, b_ref, o_ref, acc_ref):
    @pl.when(pl.program_id(2) == 0)
    def _():
        acc_ref[...] = jnp.zeros_like(acc_ref)

    acc_ref[...] += jnp.dot(x_ref[...], w_ref[...],
                            preferred_element_type=jnp.float32)

    @pl.when(pl.program_id(2) == pl.num_programs(2) - 1)
    def _():
        o_ref[...] = (acc_ref[...]
                      + b_ref[...].astype(jnp.float32)).astype(o_ref.dtype)


def _linear(x2, w, b):
    m, k = x2.shape
    n = w.shape[1]

    tm = _pick_row_tile(m)
    m_pad = _round_up(m, tm)
    if m_pad != m:
        x2 = jnp.pad(x2, ((0, m_pad - m), (0, 0)))
    tn = _pick_col_tile(n)
    # Full K when small; tile K for very large reductions (v7x VMEM budget).
    tk = k if k <= 2048 else _pick_col_tile(k)

    b2 = b.reshape(1, n)

    x_bytes = jnp.dtype(x2.dtype).itemsize
    w_bytes = jnp.dtype(w.dtype).itemsize
    vmem = (2 * (tm * tk * x_bytes + tk * tn * w_bytes + tn * w_bytes)
            + 2 * tm * tn * x_bytes          # double-buffered output tile
            + tm * tn * 4                    # f32 accumulator
            + (2 << 20))
    vmem = int(min(max(vmem, 4 << 20), _VMEM_CAP))

    out = pl.pallas_call(
        _linear_kernel,
        out_shape=jax.ShapeDtypeStruct((m_pad, n), x2.dtype),
        grid_spec=pltpu.PrefetchScalarGridSpec(
            num_scalar_prefetch=0,
            grid=(m_pad // tm, n // tn, k // tk),
            in_specs=[
                pl.BlockSpec((tm, tk), lambda i, j, kk: (i, kk)),   # x rows
                pl.BlockSpec((tk, tn), lambda i, j, kk: (kk, j)),   # W block
                pl.BlockSpec((1, tn), lambda i, j, kk: (0, j)),     # bias
            ],
            out_specs=pl.BlockSpec((tm, tn), lambda i, j, kk: (i, j)),
            scratch_shapes=[pltpu.VMEM((tm, tn), jnp.float32)],
        ),
        compiler_params=pltpu.CompilerParams(
            dimension_semantics=("parallel", "parallel", "arbitrary"),
            vmem_limit_bytes=vmem),
        cost_estimate=pl.CostEstimate(
            flops=2 * m_pad * k * n,
            transcendentals=0,
            bytes_accessed=(m_pad * k + k * n + n + m_pad * n) * x_bytes),
    )(x2, w, b2)
    return out[:m]


# ---------------------------------------------------------------------------
# Attention: one batch per grid step, all heads computed in-step,
# lane-dense (S, d_model) output slab.
# ---------------------------------------------------------------------------
def _mha_attention_kernel(qkv_ref, mask_ref, o_ref, *, num_heads, head_dim,
                          scale, mask_mode):
    shared_mask = None
    if mask_mode == "shared":
        shared_mask = mask_ref[...].astype(jnp.float32)          # (S, S)

    head_outs = []
    for h in range(num_heads):
        base = 3 * head_dim * h
        chunk = qkv_ref[0, :, base:base + 3 * head_dim].astype(jnp.float32)
        q = chunk[:, :head_dim] * scale                          # fold 1/sqrt(hd)
        k = chunk[:, head_dim:2 * head_dim]
        v = chunk[:, 2 * head_dim:3 * head_dim]

        # q @ k^T without an explicit transpose (contract last dims directly).
        s = jax.lax.dot_general(q, k, (((1,), (1,)), ((), ())),
                                preferred_element_type=jnp.float32)
        if mask_mode == "shared":
            s = s + shared_mask
        elif mask_mode == "full":
            s = s + mask_ref[0, h].astype(jnp.float32)

        m = jnp.max(s, axis=-1, keepdims=True)
        p = jnp.exp(s - m)
        denom = jnp.sum(p, axis=-1, keepdims=True)
        attn = p * pl.reciprocal(denom, approx=True)             # EUP, ~free
        head_outs.append(jnp.dot(attn, v,
                                 preferred_element_type=jnp.float32))

    # Single lane-dense store of all heads: (S, H*hd = d_model).
    o_ref[0] = jnp.concatenate(head_outs, axis=-1).astype(o_ref.dtype)


def _mha_attention_kernel_nomask(qkv_ref, o_ref, *, num_heads, head_dim, scale):
    _mha_attention_kernel(qkv_ref, None, o_ref, num_heads=num_heads,
                          head_dim=head_dim, scale=scale, mask_mode="none")


def _attention(qkv3, mask_arr, mask_mode, num_heads, head_dim):
    batch, seq, three_dm = qkv3.shape
    d_model = num_heads * head_dim
    assert three_dm == 3 * d_model
    scale = 1.0 / math.sqrt(head_dim)
    itemsize = jnp.dtype(qkv3.dtype).itemsize

    in_specs = [pl.BlockSpec((1, seq, 3 * d_model), lambda i: (i, 0, 0))]
    args = [qkv3]
    mask_bytes = 0
    if mask_mode == "shared":
        # Single (S, S) mask, resident across the whole grid.
        in_specs.append(pl.BlockSpec((seq, seq), lambda i: (0, 0)))
        args.append(mask_arr)
        mask_bytes = seq * seq * jnp.dtype(mask_arr.dtype).itemsize
    elif mask_mode == "full":
        in_specs.append(
            pl.BlockSpec((1, num_heads, seq, seq), lambda i: (i, 0, 0, 0)))
        args.append(mask_arr)
        mask_bytes = num_heads * seq * seq * jnp.dtype(mask_arr.dtype).itemsize

    if mask_mode == "none":
        kernel = functools.partial(_mha_attention_kernel_nomask,
                                   num_heads=num_heads, head_dim=head_dim,
                                   scale=scale)
    else:
        kernel = functools.partial(_mha_attention_kernel,
                                   num_heads=num_heads, head_dim=head_dim,
                                   scale=scale, mask_mode=mask_mode)

    vmem = (2 * (seq * 3 * d_model + seq * d_model) * itemsize
            + 2 * mask_bytes + (4 << 20))
    vmem = int(min(max(vmem, 4 << 20), _VMEM_CAP))

    return pl.pallas_call(
        kernel,
        out_shape=jax.ShapeDtypeStruct((batch, seq, d_model), qkv3.dtype),
        grid_spec=pltpu.PrefetchScalarGridSpec(
            num_scalar_prefetch=0,
            grid=(batch,),
            in_specs=in_specs,
            out_specs=pl.BlockSpec((1, seq, d_model), lambda i: (i, 0, 0)),
        ),
        compiler_params=pltpu.CompilerParams(
            dimension_semantics=("parallel",),
            vmem_limit_bytes=vmem),
        cost_estimate=pl.CostEstimate(
            flops=4 * batch * seq * seq * d_model,
            transcendentals=batch * num_heads * seq * seq,
            bytes_accessed=(batch * seq * 4 * d_model) * itemsize + mask_bytes),
    )(*args)


# ---------------------------------------------------------------------------
# Full MultiHeadAttention forward
# ---------------------------------------------------------------------------
@functools.partial(jax.jit, static_argnames=("num_heads",))
def multi_head_attention(x, mask, wqkv, bqkv, wo, bo, *, num_heads):
    """x: (B, S, d_model). wqkv = Wqkv^T (d_model, 3*d_model), bqkv (3*d_model,).
    wo = Wo^T (d_model, d_model), bo (d_model,). mask broadcastable to
    (H, B, S, S) per the PyTorch permute(1,0,2,3) semantics, or None."""
    batch, seq, d_model = x.shape
    head_dim = d_model // num_heads

    # --- QKV projection (Pallas), then a free reshape (no transpose) ---
    qkv = _linear(x.reshape(batch * seq, d_model), wqkv, bqkv)
    qkv = qkv.reshape(batch, seq, 3 * d_model)

    # --- mask handling (no per-(batch,head) duplication) ---
    if mask is None:
        mask_mode, mask_arr = "none", None
    elif mask.ndim <= 2:
        mask_mode = "shared"
        mask_arr = jnp.broadcast_to(mask, (seq, seq))
    else:
        mask_mode = "full"
        m = jnp.broadcast_to(mask, (num_heads, batch, seq, seq))
        mask_arr = jnp.transpose(m, (1, 0, 2, 3))        # (B, H, S, S)

    # --- attention (Pallas): heads sliced in-kernel, lane-dense output ---
    vals = _attention(qkv, mask_arr, mask_mode, num_heads, head_dim)
    # vals[b, s, h*hd + d] already matches permute(0,2,1,3).reshape layout.

    # --- output projection (Pallas) ---
    out = _linear(vals.reshape(batch * seq, d_model), wo, bo)
    return out.reshape(batch, seq, d_model)


# ---------------------------------------------------------------------------
# Pure-JAX reference (mirrors the PyTorch module op-for-op)
# ---------------------------------------------------------------------------
def _reference_mha(x, mask, wqkv, bqkv, wo, bo, num_heads):
    batch, seq, d_model = x.shape
    hd = d_model // num_heads
    qkv = x @ wqkv + bqkv
    qkv = qkv.reshape(batch, seq, num_heads, 3 * hd).transpose(0, 2, 1, 3)
    q, k, v = jnp.split(qkv, 3, axis=-1)
    scaled = jnp.einsum("bhqd,bhkd->bhqk", q, k) / jnp.sqrt(jnp.float32(hd))
    if mask is not None:
        scaled = jnp.transpose(scaled, (1, 0, 2, 3)) + mask
        scaled = jnp.transpose(scaled, (1, 0, 2, 3))
    attn = jax.nn.softmax(scaled, axis=-1)
    vals = jnp.einsum("bhqk,bhkd->bhqd", attn, v)
    vals = jnp.transpose(vals, (0, 2, 1, 3)).reshape(batch, seq, d_model)
    return vals @ wo + bo


if __name__ == "__main__":
    batch, seq, d_model, num_heads = 2, 8, 128, 4
    key = jax.random.PRNGKey(0)
    kx, k1, k2, k3, k4 = jax.random.split(key, 5)

    x = jax.random.normal(kx, (batch, seq, d_model), dtype=jnp.float32)

    # nn.Linear(d_model, 3*d_model) / nn.Linear(d_model, d_model), stored
    # transposed for x @ W^T + b, deterministic uniform init.
    bound = 1.0 / math.sqrt(d_model)
    wqkv = jax.random.uniform(k1, (d_model, 3 * d_model),
                              minval=-bound, maxval=bound, dtype=jnp.float32)
    bqkv = jax.random.uniform(k2, (3 * d_model,),
                              minval=-bound, maxval=bound, dtype=jnp.float32)
    wo = jax.random.uniform(k3, (d_model, d_model),
                            minval=-bound, maxval=bound, dtype=jnp.float32)
    bo = jax.random.uniform(k4, (d_model,),
                            minval=-bound, maxval=bound, dtype=jnp.float32)

    # Causal additive mask, shape (S, S), finite large-negative for stability.
    mask = jnp.where(jnp.tril(jnp.ones((seq, seq), dtype=bool)),
                     0.0, -1e9).astype(jnp.float32)

    out = multi_head_attention(x, mask, wqkv, bqkv, wo, bo,
                               num_heads=num_heads)
    out = jax.block_until_ready(out)

    ref = _reference_mha(x, mask, wqkv, bqkv, wo, bo, num_heads)
    assert out.shape == (batch, seq, d_model)
    # Tolerance accounts for the EUP approx-reciprocal softmax denominator.
    assert jnp.allclose(out, ref, atol=5e-3, rtol=5e-3), (
        "mismatch vs reference, max abs err = "
        f"{float(jnp.max(jnp.abs(out - ref)))}")

    print("KERNEL_OK")
</pallas_src>

<mosaic_0001>
module attributes {stable_mosaic.version = 11 : i64} {
  func.func @_linear_kernel(%arg0: i32, %arg1: i32, %arg2: i32, %arg3: memref<16x128xf32, #tpu.memory_space<vmem>>, %arg4: memref<128x128xf32, #tpu.memory_space<vmem>>, %arg5: memref<1x128xf32, #tpu.memory_space<vmem>>, %arg6: memref<16x128xf32, #tpu.memory_space<vmem>>, %arg7: memref<16x128xf32, #tpu.memory_space<vmem>>) attributes {dimension_semantics = [#tpu.dimension_semantics<parallel>, #tpu.dimension_semantics<parallel>, #tpu.dimension_semantics<arbitrary>], iteration_bounds = array<i64: 1, 1, 1>, scalar_prefetch = 0 : i64, scratch_operands = 1 : i64, tpu.core_type = #tpu.core_type<tc>, window_params = [{transform_indices = @transform_0, window_bounds = array<i64: 16, 128>}, {transform_indices = @transform_1, window_bounds = array<i64: 128, 128>}, {transform_indices = @transform_2, window_bounds = array<i64: 1, 128>}, {transform_indices = @transform_3, window_bounds = array<i64: 16, 128>}]} {
    %c0_i32 = arith.constant 0 : i32
    %0 = arith.cmpi eq, %arg2, %c0_i32 : i32
    %1 = arith.extui %0 : i1 to i32
    %c0_i32_0 = arith.constant 0 : i32
    %2 = arith.cmpi ne, %1, %c0_i32_0 : i32
    scf.if %2 {
      %cst_10 = arith.constant 0.000000e+00 : f32
      %12 = vector.broadcast %cst_10 : f32 to vector<16x128xf32>
      %c0_11 = arith.constant 0 : index
      %c0_12 = arith.constant 0 : index
      %13 = vector.load %arg7[%c0_11, %c0_12] : memref<16x128xf32, #tpu.memory_space<vmem>>, vector<16x128xf32>
      tpu.vector_store %arg7[%c0_11, %c0_12], %12 {strides = array<i32>} : memref<16x128xf32, #tpu.memory_space<vmem>>, vector<16x128xf32>,
    } else {
    }
    %c0 = arith.constant 0 : index
    %c0_1 = arith.constant 0 : index
    %3 = vector.load %arg7[%c0, %c0_1] : memref<16x128xf32, #tpu.memory_space<vmem>>, vector<16x128xf32>
    %c0_2 = arith.constant 0 : index
    %c0_3 = arith.constant 0 : index
    %4 = vector.load %arg3[%c0_2, %c0_3] : memref<16x128xf32, #tpu.memory_space<vmem>>, vector<16x128xf32>
    %c0_4 = arith.constant 0 : index
    %c0_5 = arith.constant 0 : index
    %5 = vector.load %arg4[%c0_4, %c0_5] : memref<128x128xf32, #tpu.memory_space<vmem>>, vector<128x128xf32>
    %cst = arith.constant dense<0.000000e+00> : vector<16x128xf32>
    %6 = tpu.matmul %4, %5, %cst {dimension_numbers = #tpu.dot_dimension_numbers<[1], [0], [0], [1], [0, 0, 1, 1], [], []>} : vector<16x128xf32>, vector<128x128xf32>, vector<16x128xf32> -> vector<16x128xf32>
    %7 = arith.addf %3, %6 : vector<16x128xf32>
    %c0_6 = arith.constant 0 : index
    %c0_7 = arith.constant 0 : index
    %8 = vector.load %arg7[%c0_6, %c0_7] : memref<16x128xf32, #tpu.memory_space<vmem>>, vector<16x128xf32>
    tpu.vector_store %arg7[%c0_6, %c0_7], %7 {strides = array<i32>} : memref<16x128xf32, #tpu.memory_space<vmem>>, vector<16x128xf32>,
    %c0_i32_8 = arith.constant 0 : i32
    %9 = arith.cmpi eq, %arg2, %c0_i32_8 : i32
    %10 = arith.extui %9 : i1 to i32
    %c0_i32_9 = arith.constant 0 : i32
    %11 = arith.cmpi ne, %10, %c0_i32_9 : i32
    scf.if %11 {
      %c0_10 = arith.constant 0 : index
      %c0_11 = arith.constant 0 : index
      %12 = vector.load %arg7[%c0_10, %c0_11] : memref<16x128xf32, #tpu.memory_space<vmem>>, vector<16x128xf32>
      %c0_12 = arith.constant 0 : index
      %c0_13 = arith.constant 0 : index
      %13 = vector.load %arg5[%c0_12, %c0_13] : memref<1x128xf32, #tpu.memory_space<vmem>>, vector<1x128xf32>
      %14 = vector.broadcast %13 : vector<1x128xf32> to vector<16x128xf32>
      %15 = arith.addf %12, %14 : vector<16x128xf32>
      %c0_14 = arith.constant 0 : index
      %c0_15 = arith.constant 0 : index
      %16 = vector.load %arg6[%c0_14, %c0_15] : memref<16x128xf32, #tpu.memory_space<vmem>>, vector<16x128xf32>
      tpu.vector_store %arg6[%c0_14, %c0_15], %15 {strides = array<i32>} : memref<16x128xf32, #tpu.memory_space<vmem>>, vector<16x128xf32>,
    } else {
    }
    return
  }
  func.func @transform_0(%arg0: i32, %arg1: i32, %arg2: i32) -> (i32, i32) {
    %c0_i32 = arith.constant 0 : i32
    return %arg0, %arg2 : i32, i32
  }
  func.func @transform_1(%arg0: i32, %arg1: i32, %arg2: i32) -> (i32, i32) {
    %c0_i32 = arith.constant 0 : i32
    return %arg2, %arg1 : i32, i32
  }
  func.func @transform_2(%arg0: i32, %arg1: i32, %arg2: i32) -> (i32, i32) {
    %c0_i32 = arith.constant 0 : i32
    %c0_i32_0 = arith.constant 0 : i32
    return %c0_i32, %arg1 : i32, i32
  }
  func.func @transform_3(%arg0: i32, %arg1: i32, %arg2: i32) -> (i32, i32) {
    %c0_i32 = arith.constant 0 : i32
    return %arg0, %arg1 : i32, i32
  }
}

module attributes {stable_mosaic.version = 11 : i64} {
  func.func @_mha_attention_kernel(%arg0: i32, %arg1: memref<1x8x384xf32, #tpu.memory_space<vmem>>, %arg2: memref<8x8xf32, #tpu.memory_space<vmem>>, %arg3: memref<1x8x128xf32, #tpu.memory_space<vmem>>) attributes {dimension_semantics = [#tpu.dimension_semantics<parallel>], iteration_bounds = array<i64: 2>, scalar_prefetch = 0 : i64, scratch_operands = 0 : i64, tpu.core_type = #tpu.core_type<tc>, window_params = [{transform_indices = @transform_0, window_bounds = array<i64: 1, 8, 384>}, {pipeline_mode = #tpu.pipeline_mode<synchronous>, transform_indices = @transform_1, window_bounds = array<i64: 8, 8>}, {transform_indices = @transform_2, window_bounds = array<i64: 1, 8, 128>}]} {
    %c0 = arith.constant 0 : index
    %c0_0 = arith.constant 0 : index
    %0 = vector.load %arg2[%c0, %c0_0] : memref<8x8xf32, #tpu.memory_space<vmem>>, vector<8x8xf32>
    %c0_1 = arith.constant 0 : index
    %c0_2 = arith.constant 0 : index
    %c0_3 = arith.constant 0 : index
    %1 = vector.load %arg1[%c0_1, %c0_2, %c0_3] : memref<1x8x384xf32, #tpu.memory_space<vmem>>, vector<1x8x96xf32>
    %2 = vector.shape_cast %1 : vector<1x8x96xf32> to vector<8x96xf32>
    %3 = vector.extract_strided_slice %2 {offsets = [0, 0], sizes = [8, 32], strides = [1, 1]} : vector<8x96xf32> to vector<8x32xf32>
    %cst = arith.constant 0.176776692 : f32
    %4 = vector.broadcast %cst : f32 to vector<8x32xf32>
    %5 = arith.mulf %3, %4 : vector<8x32xf32>
    %6 = vector.extract_strided_slice %2 {offsets = [0, 32], sizes = [8, 32], strides = [1, 1]} : vector<8x96xf32> to vector<8x32xf32>
    %7 = vector.extract_strided_slice %2 {offsets = [0, 64], sizes = [8, 32], strides = [1, 1]} : vector<8x96xf32> to vector<8x32xf32>
    %cst_4 = arith.constant dense<0.000000e+00> : vector<8x8xf32>
    %8 = tpu.matmul %5, %6, %cst_4 {dimension_numbers = #tpu.dot_dimension_numbers<[1], [1], [0], [0], [0, 0, 1, 0], [], []>} : vector<8x32xf32>, vector<8x32xf32>, vector<8x8xf32> -> vector<8x8xf32>
    %9 = arith.addf %8, %0 : vector<8x8xf32>
    %cst_5 = arith.constant dense<0xFF800000> : vector<8xf32>
    %10 = vector.multi_reduction <maximumf>, %9, %cst_5 [1] : vector<8x8xf32> to vector<8xf32>
    %11 = vector.shape_cast %10 : vector<8xf32> to vector<8x1xf32>
    %12 = vector.broadcast %11 : vector<8x1xf32> to vector<8x8xf32>
    %13 = arith.subf %9, %12 : vector<8x8xf32>
    %14 = math.exp %13 : vector<8x8xf32>
    %cst_6 = arith.constant dense<0.000000e+00> : vector<8xf32>
    %15 = vector.multi_reduction <add>, %14, %cst_6 [1] : vector<8x8xf32> to vector<8xf32>
    %16 = vector.shape_cast %15 : vector<8xf32> to vector<8x1xf32>
    %17 = tpu.reciprocal %16 {approx = true} : vector<8x1xf32> -> vector<8x1xf32>
    %18 = vector.broadcast %17 : vector<8x1xf32> to vector<8x8xf32>
    %19 = arith.mulf %14, %18 : vector<8x8xf32>
    %cst_7 = arith.constant dense<0.000000e+00> : vector<8x32xf32>
    %20 = tpu.matmul %19, %7, %cst_7 {dimension_numbers = #tpu.dot_dimension_numbers<[1], [0], [0], [1], [0, 0, 1, 1], [], []>} : vector<8x8xf32>, vector<8x32xf32>, vector<8x32xf32> -> vector<8x32xf32>
    %c0_8 = arith.constant 0 : index
    %c0_9 = arith.constant 0 : index
    %c96 = arith.constant 96 : index
    %21 = vector.load %arg1[%c0_8, %c0_9, %c96] : memref<1x8x384xf32, #tpu.memory_space<vmem>>, vector<1x8x96xf32>
    %22 = vector.shape_cast %21 : vector<1x8x96xf32> to vector<8x96xf32>
    %23 = vector.extract_strided_slice %22 {offsets = [0, 0], sizes = [8, 32], strides = [1, 1]} : vector<8x96xf32> to vector<8x32xf32>
    %cst_10 = arith.constant 0.176776692 : f32
    %24 = vector.broadcast %cst_10 : f32 to vector<8x32xf32>
    %25 = arith.mulf %23, %24 : vector<8x32xf32>
    %26 = vector.extract_strided_slice %22 {offsets = [0, 32], sizes = [8, 32], strides = [1, 1]} : vector<8x96xf32> to vector<8x32xf32>
    %27 = vector.extract_strided_slice %22 {offsets = [0, 64], sizes = [8, 32], strides = [1, 1]} : vector<8x96xf32> to vector<8x32xf32>
    %cst_11 = arith.constant dense<0.000000e+00> : vector<8x8xf32>
    %28 = tpu.matmul %25, %26, %cst_11 {dimension_numbers = #tpu.dot_dimension_numbers<[1], [1], [0], [0], [0, 0, 1, 0], [], []>} : vector<8x32xf32>, vector<8x32xf32>, vector<8x8xf32> -> vector<8x8xf32>
    %29 = arith.addf %28, %0 : vector<8x8xf32>
    %cst_12 = arith.constant dense<0xFF800000> : vector<8xf32>
    %30 = vector.multi_reduction <maximumf>, %29, %cst_12 [1] : vector<8x8xf32> to vector<8xf32>
    %31 = vector.shape_cast %30 : vector<8xf32> to vector<8x1xf32>
    %32 = vector.broadcast %31 : vector<8x1xf32> to vector<8x8xf32>
    %33 = arith.subf %29, %32 : vector<8x8xf32>
    %34 = math.exp %33 : vector<8x8xf32>
    %cst_13 = arith.constant dense<0.000000e+00> : vector<8xf32>
    %35 = vector.multi_reduction <add>, %34, %cst_13 [1] : vector<8x8xf32> to vector<8xf32>
    %36 = vector.shape_cast %35 : vector<8xf32> to vector<8x1xf32>
    %37 = tpu.reciprocal %36 {approx = true} : vector<8x1xf32> -> vector<8x1xf32>
    %38 = vector.broadcast %37 : vector<8x1xf32> to vector<8x8xf32>
    %39 = arith.mulf %34, %38 : vector<8x8xf32>
    %cst_14 = arith.constant dense<0.000000e+00> : vector<8x32xf32>
    %40 = tpu.matmul %39, %27, %cst_14 {dimension_numbers = #tpu.dot_dimension_numbers<[1], [0], [0], [1], [0, 0, 1, 1], [], []>} : vector<8x8xf32>, vector<8x32xf32>, vector<8x32xf32> -> vector<8x32xf32>
    %c0_15 = arith.constant 0 : index
    %c0_16 = arith.constant 0 : index
    %c192 = arith.constant 192 : index
    %41 = vector.load %arg1[%c0_15, %c0_16, %c192] : memref<1x8x384xf32, #tpu.memory_space<vmem>>, vector<1x8x96xf32>
    %42 = vector.shape_cast %41 : vector<1x8x96xf32> to vector<8x96xf32>
    %43 = vector.extract_strided_slice %42 {offsets = [0, 0], sizes = [8, 32], strides = [1, 1]} : vector<8x96xf32> to vector<8x32xf32>
    %cst_17 = arith.constant 0.176776692 : f32
    %44 = vector.broadcast %cst_17 : f32 to vector<8x32xf32>
    %45 = arith.mulf %43, %44 : vector<8x32xf32>
    %46 = vector.extract_strided_slice %42 {offsets = [0, 32], sizes = [8, 32], strides = [1, 1]} : vector<8x96xf32> to vector<8x32xf32>
    %47 = vector.extract_strided_slice %42 {offsets = [0, 64], sizes = [8, 32], strides = [1, 1]} : vector<8x96xf32> to vector<8x32xf32>
    %cst_18 = arith.constant dense<0.000000e+00> : vector<8x8xf32>
    %48 = tpu.matmul %45, %46, %cst_18 {dimension_numbers = #tpu.dot_dimension_numbers<[1], [1], [0], [0], [0, 0, 1, 0], [], []>} : vector<8x32xf32>, vector<8x32xf32>, vector<8x8xf32> -> vector<8x8xf32>
    %49 = arith.addf %48, %0 : vector<8x8xf32>
    %cst_19 = arith.constant dense<0xFF800000> : vector<8xf32>
    %50 = vector.multi_reduction <maximumf>, %49, %cst_19 [1] : vector<8x8xf32> to vector<8xf32>
    %51 = vector.shape_cast %50 : vector<8xf32> to vector<8x1xf32>
    %52 = vector.broadcast %51 : vector<8x1xf32> to vector<8x8xf32>
    %53 = arith.subf %49, %52 : vector<8x8xf32>
    %54 = math.exp %53 : vector<8x8xf32>
    %cst_20 = arith.constant dense<0.000000e+00> : vector<8xf32>
    %55 = vector.multi_reduction <add>, %54, %cst_20 [1] : vector<8x8xf32> to vector<8xf32>
    %56 = vector.shape_cast %55 : vector<8xf32> to vector<8x1xf32>
    %57 = tpu.reciprocal %56 {approx = true} : vector<8x1xf32> -> vector<8x1xf32>
    %58 = vector.broadcast %57 : vector<8x1xf32> to vector<8x8xf32>
    %59 = arith.mulf %54, %58 : vector<8x8xf32>
    %cst_21 = arith.constant dense<0.000000e+00> : vector<8x32xf32>
    %60 = tpu.matmul %59, %47, %cst_21 {dimension_numbers = #tpu.dot_dimension_numbers<[1], [0], [0], [1], [0, 0, 1, 1], [], []>} : vector<8x8xf32>, vector<8x32xf32>, vector<8x32xf32> -> vector<8x32xf32>
    %c0_22 = arith.constant 0 : index
    %c0_23 = arith.constant 0 : index
    %c288 = arith.constant 288 : index
    %61 = vector.load %arg1[%c0_22, %c0_23, %c288] : memref<1x8x384xf32, #tpu.memory_space<vmem>>, vector<1x8x96xf32>
    %62 = vector.shape_cast %61 : vector<1x8x96xf32> to vector<8x96xf32>
    %63 = vector.extract_strided_slice %62 {offsets = [0, 0], sizes = [8, 32], strides = [1, 1]} : vector<8x96xf32> to vector<8x32xf32>
    %cst_24 = arith.constant 0.176776692 : f32
    %64 = vector.broadcast %cst_24 : f32 to vector<8x32xf32>
    %65 = arith.mulf %63, %64 : vector<8x32xf32>
    %66 = vector.extract_strided_slice %62 {offsets = [0, 32], sizes = [8, 32], strides = [1, 1]} : vector<8x96xf32> to vector<8x32xf32>
    %67 = vector.extract_strided_slice %62 {offsets = [0, 64], sizes = [8, 32], strides = [1, 1]} : vector<8x96xf32> to vector<8x32xf32>
    %cst_25 = arith.constant dense<0.000000e+00> : vector<8x8xf32>
    %68 = tpu.matmul %65, %66, %cst_25 {dimension_numbers = #tpu.dot_dimension_numbers<[1], [1], [0], [0], [0, 0, 1, 0], [], []>} : vector<8x32xf32>, vector<8x32xf32>, vector<8x8xf32> -> vector<8x8xf32>
    %69 = arith.addf %68, %0 : vector<8x8xf32>
    %cst_26 = arith.constant dense<0xFF800000> : vector<8xf32>
    %70 = vector.multi_reduction <maximumf>, %69, %cst_26 [1] : vector<8x8xf32> to vector<8xf32>
    %71 = vector.shape_cast %70 : vector<8xf32> to vector<8x1xf32>
    %72 = vector.broadcast %71 : vector<8x1xf32> to vector<8x8xf32>
    %73 = arith.subf %69, %72 : vector<8x8xf32>
    %74 = math.exp %73 : vector<8x8xf32>
    %cst_27 = arith.constant dense<0.000000e+00> : vector<8xf32>
    %75 = vector.multi_reduction <add>, %74, %cst_27 [1] : vector<8x8xf32> to vector<8xf32>
    %76 = vector.shape_cast %75 : vector<8xf32> to vector<8x1xf32>
    %77 = tpu.reciprocal %76 {approx = true} : vector<8x1xf32> -> vector<8x1xf32>
    %78 = vector.broadcast %77 : vector<8x1xf32> to vector<8x8xf32>
    %79 = arith.mulf %74, %78 : vector<8x8xf32>
    %cst_28 = arith.constant dense<0.000000e+00> : vector<8x32xf32>
    %80 = tpu.matmul %79, %67, %cst_28 {dimension_numbers = #tpu.dot_dimension_numbers<[1], [0], [0], [1], [0, 0, 1, 1], [], []>} : vector<8x8xf32>, vector<8x32xf32>, vector<8x32xf32> -> vector<8x32xf32>
    %81 = tpu.concatenate %20, %40, %60, %80 in 1 : vector<8x32xf32>, vector<8x32xf32>, vector<8x32xf32>, vector<8x32xf32> -> vector<8x128xf32>
    %c0_29 = arith.constant 0 : index
    %c0_30 = arith.constant 0 : index
    %c0_31 = arith.constant 0 : index
    %82 = vector.load %arg3[%c0_29, %c0_30, %c0_31] : memref<1x8x128xf32, #tpu.memory_space<vmem>>, vector<1x8x128xf32>
    %83 = vector.shape_cast %82 : vector<1x8x128xf32> to vector<8x128xf32>
    %84 = vector.shape_cast %81 : vector<8x128xf32> to vector<1x8x128xf32>
    tpu.vector_store %arg3[%c0_29, %c0_30, %c0_31], %84 {strides = array<i32>} : memref<1x8x128xf32, #tpu.memory_space<vmem>>, vector<1x8x128xf32>,
    return
  }
  func.func @transform_0(%arg0: i32) -> (i32, i32, i32) {
    %c0_i32 = arith.constant 0 : i32
    %c0_i32_0 = arith.constant 0 : i32
    %c0_i32_1 = arith.constant 0 : i32
    return %arg0, %c0_i32, %c0_i32_0 : i32, i32, i32
  }
  func.func @transform_1(%arg0: i32) -> (i32, i32) {
    %c0_i32 = arith.constant 0 : i32
    %c0_i32_0 = arith.constant 0 : i32
    %c0_i32_1 = arith.constant 0 : i32
    return %c0_i32, %c0_i32_0 : i32, i32
  }
  func.func @transform_2(%arg0: i32) -> (i32, i32, i32) {
    %c0_i32 = arith.constant 0 : i32
    %c0_i32_0 = arith.constant 0 : i32
    %c0_i32_1 = arith.constant 0 : i32
    return %arg0, %c0_i32, %c0_i32_0 : i32, i32, i32
  }
}

module attributes {stable_mosaic.version = 11 : i64} {
  func.func @_linear_kernel(%arg0: i32, %arg1: i32, %arg2: i32, %arg3: memref<16x128xf32, #tpu.memory_space<vmem>>, %arg4: memref<128x384xf32, #tpu.memory_space<vmem>>, %arg5: memref<1x384xf32, #tpu.memory_space<vmem>>, %arg6: memref<16x384xf32, #tpu.memory_space<vmem>>, %arg7: memref<16x384xf32, #tpu.memory_space<vmem>>) attributes {dimension_semantics = [#tpu.dimension_semantics<parallel>, #tpu.dimension_semantics<parallel>, #tpu.dimension_semantics<arbitrary>], iteration_bounds = array<i64: 1, 1, 1>, scalar_prefetch = 0 : i64, scratch_operands = 1 : i64, tpu.core_type = #tpu.core_type<tc>, window_params = [{transform_indices = @transform_0, window_bounds = array<i64: 16, 128>}, {transform_indices = @transform_1, window_bounds = array<i64: 128, 384>}, {transform_indices = @transform_2, window_bounds = array<i64: 1, 384>}, {transform_indices = @transform_3, window_bounds = array<i64: 16, 384>}]} {
    %c0_i32 = arith.constant 0 : i32
    %0 = arith.cmpi eq, %arg2, %c0_i32 : i32
    %1 = arith.extui %0 : i1 to i32
    %c0_i32_0 = arith.constant 0 : i32
    %2 = arith.cmpi ne, %1, %c0_i32_0 : i32
    scf.if %2 {
      %cst_10 = arith.constant 0.000000e+00 : f32
      %12 = vector.broadcast %cst_10 : f32 to vector<16x384xf32>
      %c0_11 = arith.constant 0 : index
      %c0_12 = arith.constant 0 : index
      %13 = vector.load %arg7[%c0_11, %c0_12] : memref<16x384xf32, #tpu.memory_space<vmem>>, vector<16x384xf32>
      tpu.vector_store %arg7[%c0_11, %c0_12], %12 {strides = array<i32>} : memref<16x384xf32, #tpu.memory_space<vmem>>, vector<16x384xf32>,
    } else {
    }
    %c0 = arith.constant 0 : index
    %c0_1 = arith.constant 0 : index
    %3 = vector.load %arg7[%c0, %c0_1] : memref<16x384xf32, #tpu.memory_space<vmem>>, vector<16x384xf32>
    %c0_2 = arith.constant 0 : index
    %c0_3 = arith.constant 0 : index
    %4 = vector.load %arg3[%c0_2, %c0_3] : memref<16x128xf32, #tpu.memory_space<vmem>>, vector<16x128xf32>
    %c0_4 = arith.constant 0 : index
    %c0_5 = arith.constant 0 : index
    %5 = vector.load %arg4[%c0_4, %c0_5] : memref<128x384xf32, #tpu.memory_space<vmem>>, vector<128x384xf32>
    %cst = arith.constant dense<0.000000e+00> : vector<16x384xf32>
    %6 = tpu.matmul %4, %5, %cst {dimension_numbers = #tpu.dot_dimension_numbers<[1], [0], [0], [1], [0, 0, 1, 1], [], []>} : vector<16x128xf32>, vector<128x384xf32>, vector<16x384xf32> -> vector<16x384xf32>
    %7 = arith.addf %3, %6 : vector<16x384xf32>
    %c0_6 = arith.constant 0 : index
    %c0_7 = arith.constant 0 : index
    %8 = vector.load %arg7[%c0_6, %c0_7] : memref<16x384xf32, #tpu.memory_space<vmem>>, vector<16x384xf32>
    tpu.vector_store %arg7[%c0_6, %c0_7], %7 {strides = array<i32>} : memref<16x384xf32, #tpu.memory_space<vmem>>, vector<16x384xf32>,
    %c0_i32_8 = arith.constant 0 : i32
    %9 = arith.cmpi eq, %arg2, %c0_i32_8 : i32
    %10 = arith.extui %9 : i1 to i32
    %c0_i32_9 = arith.constant 0 : i32
    %11 = arith.cmpi ne, %10, %c0_i32_9 : i32
    scf.if %11 {
      %c0_10 = arith.constant 0 : index
      %c0_11 = arith.constant 0 : index
      %12 = vector.load %arg7[%c0_10, %c0_11] : memref<16x384xf32, #tpu.memory_space<vmem>>, vector<16x384xf32>
      %c0_12 = arith.constant 0 : index
      %c0_13 = arith.constant 0 : index
      %13 = vector.load %arg5[%c0_12, %c0_13] : memref<1x384xf32, #tpu.memory_space<vmem>>, vector<1x384xf32>
      %14 = vector.broadcast %13 : vector<1x384xf32> to vector<16x384xf32>
      %15 = arith.addf %12, %14 : vector<16x384xf32>
      %c0_14 = arith.constant 0 : index
      %c0_15 = arith.constant 0 : index
      %16 = vector.load %arg6[%c0_14, %c0_15] : memref<16x384xf32, #tpu.memory_space<vmem>>, vector<16x384xf32>
      tpu.vector_store %arg6[%c0_14, %c0_15], %15 {strides = array<i32>} : memref<16x384xf32, #tpu.memory_space<vmem>>, vector<16x384xf32>,
    } else {
    }
    return
  }
  func.func @transform_0(%arg0: i32, %arg1: i32, %arg2: i32) -> (i32, i32) {
    %c0_i32 = arith.constant 0 : i32
    return %arg0, %arg2 : i32, i32
  }
  func.func @transform_1(%arg0: i32, %arg1: i32, %arg2: i32) -> (i32, i32) {
    %c0_i32 = arith.constant 0 : i32
    return %arg2, %arg1 : i32, i32
  }
  func.func @transform_2(%arg0: i32, %arg1: i32, %arg2: i32) -> (i32, i32) {
    %c0_i32 = arith.constant 0 : i32
    %c0_i32_0 = arith.constant 0 : i32
    return %c0_i32, %arg1 : i32, i32
  }
  func.func @transform_3(%arg0: i32, %arg1: i32, %arg2: i32) -> (i32, i32) {
    %c0_i32 = arith.constant 0 : i32
    return %arg0, %arg1 : i32, i32
  }
}

</mosaic_0001>

<bundles_post_ra>
// kernel: multi_head_attention.4
= control target key start
LH: loop header
LB: loop body
LE: loop exit
PB: predicated region body
PF: predicated region fallthrough
CT: control target
= control target key end

     0   :  { %s561_s9 = smov 0   ;;  %s633_s0 = inlined_call_operand.vmem [shape: f32[2,8,384], index: 0, kind: input, shape index: {}]   ;;  %s634_s1 = inlined_call_operand.vmem [shape: f32[8,8], index: 1, kind: input, shape index: {}]   ;;  %s635_s2 = inlined_call_operand.vmem [shape: f32[2,8,128], index: 2, kind: output, shape index: {}]  }
   0x1 LB: > { %s486_s10 = sadd.s32 4294967295, %s541_s9   ;;  %p490_p0 = scmp.ge.s32.totalorder %s541_s9, 1  ;;  %s541_s9 = sphi %s561_s9, %s12_s9  }
   0x2   : > { %p112_p1 = scmp.lt.s32.totalorder %s541_s9, 3 }
   0x4   : > { %p113_p2 = pnand %p490_p0, %p112_p1 }
   0x5   : > { %p133_p3 = scmp.lt.s32.totalorder (!%p113_p2), %s486_s10, 1  ;;  %s543_s15 = smov (!%p113_p2), 96  }
   0x6   : > { %116 = sbr.rel (%p113_p2) target bundleno = 1203 (0x4b3), region = 28  ;;  %s544_s16 = smov (!%p113_p2), 64  }
   0x7   : > { %s545_s17 = smov (!%p113_p2), 32  }
   0xb   : > { %s637_s10 = smov (!%p133_p3, %s486_s10), 1  ;;  %vm148_vm0 = vcmask 261120   ;;  %v142_v7 = vld [vmem:[%s634_s1] sm:$0xff]  ;;  %vm174_vm1 = vcmask 64512   ;;  %vm428_vm2 = vcmask 523264   ;;  %vm430_vm3 = vcmask 785408  }
   0xc   : > { %s507_s11 = smul.u32 24, %s637_s10  ;;  %s492_s20 = sshll.u32 %s637_s10, 3 }
   0xd   : > { %s141_s23 = scalar_lea.vmem %s635_s2, %s492_s20 }
   0xe   : > { %s137_s14 = scalar_lea.vmem %s633_s0, %s507_s11 }
   0xf   : > { %v143_v0 = vld [vmem:[%s137_s14] sm:$0xff]  ;;  %v579_v3 = vld [vmem:[%s137_s14 + $0x8] sm:$0xff]  ;;  %v585_v4 = vld [vmem:[%s137_s14 + $0x10] sm:$0xff] }
  0x10   : > { %146 = vrot.lane.b32.xlu0 %v143_v0, %s543_s15  ;;  %v144_v2 = vmul.f32 0.17677669, %v143_v0  ;;  %186 = vrot.lane.b32.xlu2 %v143_v0, %s544_s16  ;;  %v282_v5 = vmul.f32 0.17677669, %v579_v3  ;;  %v347_v6 = vmul.f32 0.17677669, %v585_v4 }
  0x11   : > { %496 = vmatpush.xpose.msk.msra.mxu2 %vm148_vm0, %v579_v3 }
  0x18   : > { %287 = vrot.lane.b32.xlu2 %v579_v3, %s545_s17 }
  0x20   : > { %352 = vrot.lane.b32.xlu2 %v585_v4, %s544_s16 }
  0x28   : > { %284 = vrot.lane.b32.xlu2 %v282_v5, %s544_s16 }
  0x30   : > { %349 = vrot.lane.b32.xlu2 %v347_v6, %s543_s15 }
  0x6a   : > { %v187_v11 = vpop.permute.xlu2 %186 }
  0x6b   : > { %207 = vmatpush.msra.mxu1 %v187_v11 }
  0x72   : > { %v288_v12 = vpop.permute.xlu2 %287 }
  0x73   : > { %499 = vmatpush.xpose.msk.msrb.mxu1 %vm148_vm0, %v288_v12 }
  0x7a   : > { %v353_v13 = vpop.permute.xlu2 %352 }
  0x82   : > { %v147_v1 = vpop.permute.xlu0 %146  ;;  %v285_v14 = vpop.permute.xlu2 %284 }
  0x83   : > { %493 = vmatpush.xpose.msk.msra.mxu0 %vm148_vm0, %v147_v1 }
  0x86   : > { %494 = vmatmul.msk.f32.vlgmr.msra.gmra.mxu0 %vm148_vm0, %v144_v2 }
  0x87   : > { %502 = vmatpush.xpose.msk.msrb.mxu0 %vm148_vm0, %v353_v13 }
  0x8a   : > { %v350_v18 = vpop.permute.xlu2 %349 }
  0x8e   : > { %503 = vmatmul.msk.f32.vlgmr.msrb.gmra.mxu0 %vm148_vm0, %v350_v18 }
 0x103   : > { %v171_v8 = vpop.f32.mrf.mxu0 }
 0x104   : > { %v172_v9 = vadd.f32 %v171_v8, %v142_v7 }
 0x106   : > { %v175_v10 = vsel %vm174_vm1, %v172_v9, -inf }
 0x107   : > { %176 = vmax.xlane.f32.xlu0 %v175_v10 }
 0x10b   : > { %v375_v22 = vpop.f32.mrf.mxu0 }
 0x10c   : > { %v376_v23 = vadd.f32 %v375_v22, %v142_v7 }
 0x10e   : > { %v378_v24 = vsel %vm174_vm1, %v376_v23, -inf }
 0x10f   : > { %379 = vmax.xlane.f32.xlu0 %v378_v24 }
 0x17a   : > { %v177_v15 = vpop.xlane.xlu0 %176 }
 0x17b   : > { %v178_v16 = vsub.f32 %v172_v9, %v177_v15 }
 0x17d   : > { %v179_v17 = vmul.f32 1.442695, %v178_v16 }
 0x17f   : > { %519 = vpow2.f32 %v179_v17 }
 0x182   : > { %v380_v31 = vpop.xlane.xlu0 %379 }
 0x183   : > { %v381_v33 = vsub.f32 %v376_v23, %v380_v31 }
 0x185   : > { %v520_v19 = vpop.eup %519  ;;  %v382_v34 = vmul.f32 1.442695, %v381_v33 }
 0x186   : > { %v181_v20 = vsel %vm174_vm1, %v520_v19, 0.0 }
 0x187   : > { %182 = vadd.xlane.f32.xlu1 %v181_v20 }
 0x1a0   : > { %216 = vrot.lane.b32.xlu1 %v144_v2, %s545_s17 }
 0x1fa   : > { %v183_v21 = vpop.xlane.xlu1 %182 }
 0x1fb   : > { %521 = vrcp.f32 %v183_v21 }
 0x1fc   : > { %523 = vpow2.f32 %v382_v34 }
 0x201   : > { %v522_v25 = vpop.eup %521 }
 0x202   : > { %v185_v26 = vmul.f32 %v522_v25, %v520_v19  ;;  %v524_v38 = vpop.eup %523 }
 0x203   : > { %v384_v39 = vsel %vm174_vm1, %v524_v38, 0.0 }
 0x204   : > { %495 = vmatmul.msk.f32.vlgmr.msra.gmra.mxu1 %vm174_vm1, %v185_v26 }
 0x20c   : > { %500 = vmatmul.msk.f32.vlgmr.msrb.gmra.mxu1 %vm148_vm0, %v285_v14 }
 0x212   : > { %v217_v27 = vpop.permute.xlu1 %216 }
 0x213   : > { %497 = vmatmul.msk.f32.vlgmr.msra.gmra.mxu2 %vm148_vm0, %v217_v27 }
 0x281   : > { %v606_v28 = vpop.f32.mrf.mxu1 }
 0x289   : > { %v310_v29 = vpop.f32.mrf.mxu1 }
 0x28a   : > { %v311_v30 = vadd.f32 %v310_v29, %v142_v7 }
 0x28c   : > { %v313_v32 = vsel %vm174_vm1, %v311_v30, -inf }
 0x28d   : > { %314 = vmax.xlane.f32.xlu2 %v313_v32 }
 0x296   : > { %v240_v35 = vpop.f32.mrf.mxu2 }
 0x297   : > { %v241_v36 = vadd.f32 %v240_v35, %v142_v7 }
 0x299   : > { %v243_v37 = vsel %vm174_vm1, %v241_v36, -inf }
 0x29a   : > { %244 = vmax.xlane.f32.xlu1 %v243_v37 }
 0x2a2   : > { %385 = vadd.xlane.f32.xlu1 %v384_v39 }
 0x2a5   : > { %389 = vrot.lane.b32.xlu2 %v585_v4, %s545_s17 }
 0x300   : > { %v315_v40 = vpop.xlane.xlu2 %314 }
 0x301   : > { %v316_v44 = vsub.f32 %v311_v30, %v315_v40 }
 0x303   : > { %v317_v46 = vmul.f32 1.442695, %v316_v44 }
 0x308   : > { %v390_v41 = vpop.permute.xlu2 %389 }
 0x309   : > { %410 = vmatpush.msrb.mxu2 %v390_v41 }
 0x30d   : > { %v245_v42 = vpop.xlane.xlu1 %244 }
 0x30e   : > { %v246_v43 = vsub.f32 %v241_v36, %v245_v42 }
 0x310   : > { %v247_v45 = vmul.f32 1.442695, %v246_v43 }
 0x312   : > { %525 = vpow2.f32 %v247_v45 }
 0x315   : > { %v386_v47 = vpop.xlane.xlu1 %385 }
 0x316   : > { %527 = vrcp.f32 %v386_v47 }
 0x317   : > { %529 = vpow2.f32 %v317_v46 }
 0x318   : > { %v526_v48 = vpop.eup %525 }
 0x319   : > { %v249_v49 = vsel %vm174_vm1, %v526_v48, 0.0 }
 0x31a   : > { %250 = vadd.xlane.f32.xlu0 %v249_v49 }
 0x31c   : > { %v528_v50 = vpop.eup %527 }
 0x31d   : > { %v388_v51 = vmul.f32 %v528_v50, %v524_v38  ;;  %v530_v52 = vpop.eup %529 }
 0x31e   : > { %v319_v53 = vsel %vm174_vm1, %v530_v52, 0.0 }
 0x31f   : > { %504 = vmatmul.msk.f32.vlgmr.msrb.gmra.mxu2 %vm174_vm1, %v388_v51 }
 0x322   : > { %320 = vadd.xlane.f32.xlu0 %v319_v53 }
 0x336   : > { %254 = vrot.lane.b32.xlu0 %v579_v3, %s543_s15 }
 0x38d   : > { %v251_v54 = vpop.xlane.xlu0 %250 }
 0x38e   : > { %531 = vrcp.f32 %v251_v54 }
 0x394   : > { %v532_v56 = vpop.eup %531 }
 0x395   : > { %v321_v55 = vpop.xlane.xlu0 %320  ;;  %v253_v58 = vmul.f32 %v532_v56, %v526_v48 }
 0x396   : > { %533 = vrcp.f32 %v321_v55 }
 0x39c   : > { %v534_v59 = vpop.eup %533 }
 0x39d   : > { %v323_v60 = vmul.f32 %v534_v59, %v530_v52 }
 0x3a2   : > { %v412_v63 = vpop.f32.mrf.mxu2 }
 0x3a8   : > { %v255_v57 = vpop.permute.xlu0 %254 }
 0x3a9   : > { %275 = vmatpush.msra.mxu3 %v255_v57 }
 0x3aa   : > { %498 = vmatmul.msk.f32.vlgmr.msra.gmra.mxu3 %vm174_vm1, %v253_v58 }
 0x3ab   : > { %342 = vmatpush.msrb.mxu3 %v585_v4 }
 0x3b2   : > { %501 = vmatmul.msk.f32.vlgmr.msrb.gmra.mxu3 %vm174_vm1, %v323_v60 }
 0x42d   : > { %v277_v61 = vpop.f32.mrf.mxu3 }
 0x42e   : > { %416 = vrot.lane.b32.xlu1 %v277_v61, %s545_s17 }
 0x435   : > { %v344_v62 = vpop.f32.mrf.mxu3 }
 0x436   : > { %420 = vrot.lane.b32.xlu0 %v344_v62, %s544_s16 }
 0x43e   : > { %424 = vrot.lane.b32.xlu0 %v412_v63, %s543_s15 }
 0x4a0   : > { %v417_v1 = vpop.permute.xlu1 %416 }
 0x4a1   : > { %v427_v2 = vsel %vm148_vm0, %v606_v28, %v417_v1 }
 0x4a8   : > { %v421_v0 = vpop.permute.xlu0 %420 }
 0x4a9   : > { %v429_v3 = vsel %vm428_vm2, %v427_v2, %v421_v0 }
 0x4b0   : > { %v425_v4 = vpop.permute.xlu0 %424 }
 0x4b1   : > { %v431_v5 = vsel %vm430_vm3, %v429_v3, %v425_v4 }
 0x4b2   : > { %432 = vst [vmem:[%s141_s23] sm:$0xff] %v431_v5 }
 0x4b3 PF: > { %s12_s9 = sadd.s32 1, %s541_s9  }
 0x4b4   : > { %p9_p4 = scmp.ge.s32.totalorder %s12_s9, 4  }
 0x4b6   :  { %11 = sbr.rel (!%p9_p4) target bundleno = 1 (0x1), region = 58 }

// kernel: multi_head_attention.5
= control target key start
LH: loop header
LB: loop body
LE: loop exit
PB: predicated region body
PF: predicated region fallthrough
CT: control target
= control target key end

     0   :  { %s228_s0 = inlined_call_operand.vmem [shape: f32[16,128], index: 0, kind: input, shape index: {}]   ;;  %s229_s1 = inlined_call_operand.vmem [shape: f32[128,128], index: 1, kind: input, shape index: {}]   ;;  %s230_s2 = inlined_call_operand.vmem [shape: f32[1,128], index: 2, kind: input, shape index: {}]   ;;  %s231_s3 = inlined_call_operand.hbm [shape: f32[16,128], index: 3, kind: output, shape index: {}]  }
   0x1   :  { %v40_v0 = vld [vmem:[%s229_s1 + $0x78] sm:$0xff]  ;;  %v39_v1 = vld [vmem:[%s229_s1 + $0x70] sm:$0xff]  ;;  %v38_v2 = vld [vmem:[%s229_s1 + $0x68] sm:$0xff] }
   0x2   :  { %41 = vmatpush.msra.mxu0 %v40_v0  ;;  %99 = vmatpush.msra.mxu1 %v40_v0  ;;  %v37_v3 = vld [vmem:[%s229_s1 + $0x60] sm:$0xff]  ;;  %v36_v4 = vld [vmem:[%s229_s1 + $0x58] sm:$0xff] }
   0x4   :  { %42 = vmatpush.msra.mxu0 %v39_v1  ;;  %100 = vmatpush.msra.mxu1 %v39_v1 }
   0x6   :  { %43 = vmatpush.msra.mxu0 %v38_v2  ;;  %101 = vmatpush.msra.mxu1 %v38_v2 }
   0x7   :  { %8 = vsyncpa [#allocation4], 0  ;;  %v35_v5 = vld [vmem:[%s229_s1 + $0x50] sm:$0xff]  ;;  %v34_v6 = vld [vmem:[%s229_s1 + $0x48] sm:$0xff]  ;;  %s145_s23 = smov [#allocation3]   ;;  %s87_s26 = sshll.u32 %s231_s3, 4  ;;  %s88_s26 = int_to_ptr.hbm [resolvable:$true] %s87_s26 }
   0x8   :  { %44 = vmatpush.msra.mxu0 %v37_v3  ;;  %102 = vmatpush.msra.mxu1 %v37_v3  ;;  %v33_v7 = vld [vmem:[%s229_s1 + $0x40] sm:$0xff]  ;;  %v32_v8 = vld [vmem:[%s229_s1 + $0x38] sm:$0xff]  ;;  %v31_v9 = vld [vmem:[%s229_s1 + $0x30] sm:$0xff]  ;;  %s147_s27 = smov 8  }
   0x9   :  { %v30_v10 = vld [vmem:[%s229_s1 + $0x28] sm:$0xff]  ;;  %v29_v11 = vld [vmem:[%s229_s1 + $0x20] sm:$0xff]  ;;  %v28_v12 = vld [vmem:[%s229_s1 + $0x18] sm:$0xff] }
   0xa   :  { %45 = vmatpush.msra.mxu0 %v36_v4  ;;  %103 = vmatpush.msra.mxu1 %v36_v4  ;;  %v27_v13 = vld [vmem:[%s229_s1 + $0x10] sm:$0xff]  ;;  %v26_v14 = vld [vmem:[%s229_s1 + $0x8] sm:$0xff]  ;;  %v25_v15 = vld [vmem:[%s229_s1] sm:$0xff]  ;;  %s85_s1 = sshll.u32 %s145_s23, 4  ;;  %s86_s1 = int_to_ptr.vmem [resolvable:$true] %s85_s1 }
   0xb   :  { %v23_v16 = vld [vmem:[%s228_s0] sm:$0xff]  ;;  %v24_v17 = vld [vmem:[%s228_s0 + $0x8] sm:$0xff]  ;;  %s146_s0 = smov 128  }
   0xc   :  { %46 = vmatpush.msra.mxu0 %v35_v5  ;;  %104 = vmatpush.msra.mxu1 %v35_v5  ;;  %v118_v18 = vld [vmem:[%s230_s2] ss:$0 sm:$0xff] }
   0xe   :  { %47 = vmatpush.msra.mxu0 %v34_v6  ;;  %105 = vmatpush.msra.mxu1 %v34_v6 }
  0x10   :  { %48 = vmatpush.msra.mxu0 %v33_v7  ;;  %106 = vmatpush.msra.mxu1 %v33_v7 }
  0x12   :  { %49 = vmatpush.msra.mxu0 %v32_v8  ;;  %107 = vmatpush.msra.mxu1 %v32_v8 }
  0x14   :  { %50 = vmatpush.msra.mxu0 %v31_v9  ;;  %108 = vmatpush.msra.mxu1 %v31_v9 }
  0x16   :  { %51 = vmatpush.msra.mxu0 %v30_v10  ;;  %109 = vmatpush.msra.mxu1 %v30_v10 }
  0x18   :  { %52 = vmatpush.msra.mxu0 %v29_v11  ;;  %110 = vmatpush.msra.mxu1 %v29_v11 }
  0x1a   :  { %53 = vmatpush.msra.mxu0 %v28_v12  ;;  %111 = vmatpush.msra.mxu1 %v28_v12 }
  0x1c   :  { %54 = vmatpush.msra.mxu0 %v27_v13  ;;  %112 = vmatpush.msra.mxu1 %v27_v13 }
  0x1e   :  { %55 = vmatpush.msra.mxu0 %v26_v14  ;;  %113 = vmatpush.msra.mxu1 %v26_v14 }
  0x20   :  { %56 = vmatpush.msra.mxu0 %v25_v15  ;;  %114 = vmatpush.msra.mxu1 %v25_v15 }
  0x21   :  { %57 = vmatmul.f32.vlgmr.msra.gmra.mxu0 %v23_v16  ;;  %60 = vmatmul.f32.vlgmr.msra.gmra.mxu1 %v24_v17 }
  0x9e   :  { %v58_v19 = vpop.f32.mrf.mxu0  ;;  %v61_v20 = vpop.f32.mrf.mxu1 }
  0x9f   :  { %v77_v21 = vadd.f32 %v118_v18, %v58_v19  ;;  %v78_v22 = vadd.f32 %v118_v18, %v61_v20 }
  0xa1   :  { %79 = vst [vmem:[#allocation3] sm:$0xff] %v77_v21 }
  0xa2   :  { %80 = vst [vmem:[#allocation3 + $0x8] sm:$0xff] %v78_v22 }
  0xa3   :  { %93 = dma.vmem_to_hbm [thread:$0]  %s86_s1, 256, %s88_s26, [#allocation4], %s146_s0, %s146_s0, %s147_s27  }
  0xa4   :  { %143 = dma.done.wait [#allocation4], 256  }
  0xa5   :  { %144 = vsyncadd [#allocation4], 4294967040 }
  0xa6   :  { %98 = vsyncpa [#allocation4], 1 }

// kernel: multi_head_attention.3
= control target key start
LH: loop header
LB: loop body
LE: loop exit
PB: predicated region body
PF: predicated region fallthrough
CT: control target
= control target key end

     0   :  { %8 = vsyncpa [#allocation4], 0  ;;  %s355_s0 = inlined_call_operand.hbm [shape: f32[16,128], index: 0, kind: input, shape index: {}]   ;;  %s356_s1 = inlined_call_operand.hbm [shape: f32[128,384], index: 1, kind: input, shape index: {}]   ;;  %s357_s2 = inlined_call_operand.vmem [shape: f32[1,384], index: 2, kind: input, shape index: {}]   ;;  %s358_s3 = inlined_call_operand.vmem [shape: f32[16,384], index: 3, kind: output, shape index: {}]  }
   0x1   :  { %s14_s14 = sshll.u32 %s355_s0, 4  ;;  %s15_s14 = int_to_ptr.hbm [resolvable:$true] %s14_s14 }
   0x2   :  { %9 = vsyncpa [#allocation6], 0  ;;  %s302_s15 = smov [#allocation3]   ;;  %s27_s19 = sshll.u32 %s356_s1, 4  ;;  %s28_s19 = int_to_ptr.hbm [resolvable:$true] %s27_s19 }
   0x3   :  { %s16_s16 = sshll.u32 %s302_s15, 4  ;;  %s303_s20 = smov 128   ;;  %s17_s16 = int_to_ptr.vmem [resolvable:$true] %s16_s16 }
   0x4   :  { %s304_s21 = smov 8   ;;  %s305_s22 = smov [#allocation5]  }
   0x5   :  { %22 = dma.hbm_to_vmem [thread:$0]  %s15_s14, 256, %s17_s16, [#allocation4], %s303_s20, %s303_s20, %s304_s21  }
   0x6   :  { %s29_s23 = sshll.u32 %s305_s22, 4  ;;  %s306_s24 = smov 384   ;;  %s30_s23 = int_to_ptr.vmem [resolvable:$true] %s29_s23 }
   0x7   :  { %s307_s25 = smov 24  }
   0x8   :  { %35 = dma.hbm_to_vmem [thread:$0]  %s28_s19, 6144, %s30_s23, [#allocation6], %s306_s24, %s306_s24, %s307_s25  }
   0x9   :  { %298 = dma.done.wait [#allocation4], 256  }
   0xa   :  { %299 = vsyncadd [#allocation4], 4294967040 }
   0xb   :  { %300 = dma.done.wait [#allocation6], 6144  }
   0xc   :  { %301 = vsyncadd [#allocation6], 4294961152  ;;  %v111_v0 = vld [vmem:[#allocation5 + $0x178] sm:$0xff]  ;;  %v108_v1 = vld [vmem:[#allocation5 + $0x160] sm:$0xff] }
   0xd   :  { %158 = vmatpush.msra.mxu2 %v111_v0  ;;  %v110_v2 = vld [vmem:[#allocation5 + $0x170] sm:$0xff]  ;;  %v109_v3 = vld [vmem:[#allocation5 + $0x168] sm:$0xff]  ;;  %v107_v5 = vld [vmem:[#allocation5 + $0x158] sm:$0xff] }
   0xe   :  { %v105_v4 = vld [vmem:[#allocation5 + $0x148] sm:$0xff]  ;;  %135 = vmatpush.msra.mxu1 %v110_v2  ;;  %228 = vmatpush.msra.mxu3 %v109_v3  ;;  %v106_v6 = vld [vmem:[#allocation5 + $0x150] sm:$0xff]  ;;  %v104_v7 = vld [vmem:[#allocation5 + $0x140] sm:$0xff] }
   0xf   :  { %159 = vmatpush.msra.mxu2 %v108_v1  ;;  %v103_v8 = vld [vmem:[#allocation5 + $0x138] sm:$0xff]  ;;  %112 = vmatpush.msra.mxu0 %v109_v3  ;;  %v102_v9 = vld [vmem:[#allocation5 + $0x130] sm:$0xff]  ;;  %v101_v10 = vld [vmem:[#allocation5 + $0x128] sm:$0xff] }
  0x10   :  { %136 = vmatpush.msra.mxu1 %v107_v5  ;;  %229 = vmatpush.msra.mxu3 %v106_v6  ;;  %v100_v11 = vld [vmem:[#allocation5 + $0x120] sm:$0xff]  ;;  %v99_v12 = vld [vmem:[#allocation5 + $0x118] sm:$0xff]  ;;  %v98_v13 = vld [vmem:[#allocation5 + $0x110] sm:$0xff] }
  0x11   :  { %160 = vmatpush.msra.mxu2 %v105_v4  ;;  %113 = vmatpush.msra.mxu0 %v106_v6  ;;  %v97_v14 = vld [vmem:[#allocation5 + $0x108] sm:$0xff]  ;;  %v96_v15 = vld [vmem:[#allocation5 + $0x100] sm:$0xff]  ;;  %v95_v16 = vld [vmem:[#allocation5 + $0xf8] sm:$0xff] }
  0x12   :  { %137 = vmatpush.msra.mxu1 %v104_v7  ;;  %230 = vmatpush.msra.mxu3 %v103_v8  ;;  %v94_v17 = vld [vmem:[#allocation5 + $0xf0] sm:$0xff]  ;;  %v93_v18 = vld [vmem:[#allocation5 + $0xe8] sm:$0xff]  ;;  %v92_v19 = vld [vmem:[#allocation5 + $0xe0] sm:$0xff] }
  0x13   :  { %161 = vmatpush.msra.mxu2 %v102_v9  ;;  %114 = vmatpush.msra.mxu0 %v103_v8  ;;  %v91_v20 = vld [vmem:[#allocation5 + $0xd8] sm:$0xff]  ;;  %v90_v21 = vld [vmem:[#allocation5 + $0xd0] sm:$0xff]  ;;  %v89_v22 = vld [vmem:[#allocation5 + $0xc8] sm:$0xff] }
  0x14   :  { %138 = vmatpush.msra.mxu1 %v101_v10  ;;  %231 = vmatpush.msra.mxu3 %v100_v11  ;;  %v88_v23 = vld [vmem:[#allocation5 + $0xc0] sm:$0xff]  ;;  %v87_v24 = vld [vmem:[#allocation5 + $0xb8] sm:$0xff]  ;;  %v86_v25 = vld [vmem:[#allocation5 + $0xb0] sm:$0xff] }
  0x15   :  { %162 = vmatpush.msra.mxu2 %v99_v12  ;;  %115 = vmatpush.msra.mxu0 %v100_v11  ;;  %v85_v26 = vld [vmem:[#allocation5 + $0xa8] sm:$0xff]  ;;  %v84_v27 = vld [vmem:[#allocation5 + $0xa0] sm:$0xff]  ;;  %v83_v28 = vld [vmem:[#allocation5 + $0x98] sm:$0xff] }
  0x16   :  { %139 = vmatpush.msra.mxu1 %v98_v13  ;;  %232 = vmatpush.msra.mxu3 %v97_v14  ;;  %v82_v29 = vld [vmem:[#allocation5 + $0x90] sm:$0xff]  ;;  %v81_v30 = vld [vmem:[#allocation5 + $0x88] sm:$0xff]  ;;  %v80_v31 = vld [vmem:[#allocation5 + $0x80] sm:$0xff] }
  0x17   :  { %163 = vmatpush.msra.mxu2 %v96_v15  ;;  %116 = vmatpush.msra.mxu0 %v97_v14  ;;  %v79_v32 = vld [vmem:[#allocation5 + $0x78] sm:$0xff]  ;;  %v78_v33 = vld [vmem:[#allocation5 + $0x70] sm:$0xff]  ;;  %v77_v34 = vld [vmem:[#allocation5 + $0x68] sm:$0xff] }
  0x18   :  { %140 = vmatpush.msra.mxu1 %v95_v16  ;;  %233 = vmatpush.msra.mxu3 %v94_v17  ;;  %v76_v35 = vld [vmem:[#allocation5 + $0x60] sm:$0xff]  ;;  %v75_v36 = vld [vmem:[#allocation5 + $0x58] sm:$0xff]  ;;  %v74_v37 = vld [vmem:[#allocation5 + $0x50] sm:$0xff] }
  0x19   :  { %164 = vmatpush.msra.mxu2 %v93_v18  ;;  %117 = vmatpush.msra.mxu0 %v94_v17  ;;  %v73_v38 = vld [vmem:[#allocation5 + $0x48] sm:$0xff]  ;;  %v72_v39 = vld [vmem:[#allocation5 + $0x40] sm:$0xff]  ;;  %v71_v40 = vld [vmem:[#allocation5 + $0x38] sm:$0xff] }
  0x1a   :  { %141 = vmatpush.msra.mxu1 %v92_v19  ;;  %234 = vmatpush.msra.mxu3 %v91_v20  ;;  %v70_v41 = vld [vmem:[#allocation5 + $0x30] sm:$0xff]  ;;  %v69_v42 = vld [vmem:[#allocation5 + $0x28] sm:$0xff]  ;;  %v68_v43 = vld [vmem:[#allocation5 + $0x20] sm:$0xff] }
  0x1b   :  { %165 = vmatpush.msra.mxu2 %v90_v21  ;;  %118 = vmatpush.msra.mxu0 %v91_v20  ;;  %v67_v44 = vld [vmem:[#allocation5 + $0x18] sm:$0xff]  ;;  %v66_v45 = vld [vmem:[#allocation5 + $0x10] sm:$0xff]  ;;  %v65_v47 = vld [vmem:[#allocation5 + $0x8] sm:$0xff] }
  0x1c   :  { %142 = vmatpush.msra.mxu1 %v89_v22  ;;  %235 = vmatpush.msra.mxu3 %v88_v23  ;;  %v62_v46 = vld [vmem:[#allocation3] sm:$0xff]  ;;  %v64_v48 = vld [vmem:[#allocation5] sm:$0xff]  ;;  %v63_v49 = vld [vmem:[#allocation3 + $0x8] sm:$0xff] }
  0x1d   :  { %166 = vmatpush.msra.mxu2 %v87_v24  ;;  %119 = vmatpush.msra.mxu0 %v88_v23  ;;  %v202_v50 = vld [vmem:[%s357_s2] sm:$0x7] }
  0x1e   :  { %143 = vmatpush.msra.mxu1 %v86_v25  ;;  %236 = vmatpush.msra.mxu3 %v85_v26  ;;  %v205_v51 = vperm.slane %v202_v50, 1  ;;  %v204_v52 = vperm.slane %v202_v50, 0  ;;  %v206_v55 = vperm.slane %v202_v50, 2 }
  0x1f   :  { %167 = vmatpush.msra.mxu2 %v84_v27  ;;  %120 = vmatpush.msra.mxu0 %v85_v26 }
  0x20   :  { %144 = vmatpush.msra.mxu1 %v83_v28  ;;  %237 = vmatpush.msra.mxu3 %v82_v29 }
  0x21   :  { %168 = vmatpush.msra.mxu2 %v81_v30  ;;  %121 = vmatpush.msra.mxu0 %v82_v29 }
  0x22   :  { %145 = vmatpush.msra.mxu1 %v80_v31  ;;  %238 = vmatpush.msra.mxu3 %v79_v32 }
  0x23   :  { %169 = vmatpush.msra.mxu2 %v78_v33  ;;  %122 = vmatpush.msra.mxu0 %v79_v32 }
  0x24   :  { %146 = vmatpush.msra.mxu1 %v77_v34  ;;  %239 = vmatpush.msra.mxu3 %v76_v35 }
  0x25   :  { %170 = vmatpush.msra.mxu2 %v75_v36  ;;  %123 = vmatpush.msra.mxu0 %v76_v35 }
  0x26   :  { %147 = vmatpush.msra.mxu1 %v74_v37  ;;  %240 = vmatpush.msra.mxu3 %v73_v38 }
  0x27   :  { %171 = vmatpush.msra.mxu2 %v72_v39  ;;  %124 = vmatpush.msra.mxu0 %v73_v38 }
  0x28   :  { %148 = vmatpush.msra.mxu1 %v71_v40  ;;  %241 = vmatpush.msra.mxu3 %v70_v41 }
  0x29   :  { %172 = vmatpush.msra.mxu2 %v69_v42  ;;  %125 = vmatpush.msra.mxu0 %v70_v41 }
  0x2a   :  { %149 = vmatpush.msra.mxu1 %v68_v43  ;;  %242 = vmatpush.msra.mxu3 %v67_v44 }
  0x2b   :  { %173 = vmatpush.msra.mxu2 %v66_v45  ;;  %126 = vmatpush.msra.mxu0 %v67_v44 }
  0x2c   :  { %174 = vmatmul.f32.vlgmr.msra.gmra.mxu2 %v62_v46  ;;  %150 = vmatpush.msra.mxu1 %v65_v47 }
  0x2d   :  { %151 = vmatmul.f32.vlgmr.msra.gmra.mxu1 %v62_v46  ;;  %243 = vmatpush.msra.mxu3 %v64_v48 }
  0x2e   :  { %131 = vmatmul.f32.vlgmr.msra.gmra.mxu3 %v63_v49  ;;  %127 = vmatpush.msra.mxu0 %v64_v48 }
  0x2f   :  { %128 = vmatmul.f32.vlgmr.msra.gmra.mxu0 %v62_v46 }
  0x34   :  { %177 = vmatmul.f32.gmra.mxu2 %v63_v49 }
  0x35   :  { %154 = vmatmul.f32.gmra.mxu1 %v63_v49 }
  0xaa   :  { %v152_v53 = vpop.f32.mrf.mxu1 }
  0xab   :  { %v211_v54 = vadd.f32 %v205_v51, %v152_v53 }
  0xac   :  { %v129_v56 = vpop.f32.mrf.mxu0 }
  0xad   :  { %217 = vst [vmem:[%s358_s3 + $0x8] sm:$0xff] %v211_v54  ;;  %v210_v57 = vadd.f32 %v204_v52, %v129_v56 }
  0xaf   :  { %v175_v58 = vpop.f32.mrf.mxu2  ;;  %216 = vst [vmem:[%s358_s3] sm:$0xff] %v210_v57 }
  0xb0   :  { %v212_v59 = vadd.f32 %v206_v55, %v175_v58 }
  0xb1   :  { %v132_v60 = vpop.f32.mrf.mxu3 }
  0xb2   :  { %218 = vst [vmem:[%s358_s3 + $0x10] sm:$0xff] %v212_v59  ;;  %v213_v61 = vadd.f32 %v204_v52, %v132_v60  ;;  %v155_v62 = vpop.f32.mrf.mxu1 }
  0xb3   :  { %v214_v63 = vadd.f32 %v205_v51, %v155_v62 }
  0xb4   :  { %219 = vst [vmem:[%s358_s3 + $0x18] sm:$0xff] %v213_v61 }
  0xb5   :  { %220 = vst [vmem:[%s358_s3 + $0x20] sm:$0xff] %v214_v63 }
  0xb7   :  { %v178_v0 = vpop.f32.mrf.mxu2 }
  0xb8   :  { %v215_v1 = vadd.f32 %v206_v55, %v178_v0 }
  0xba   :  { %221 = vst [vmem:[%s358_s3 + $0x28] sm:$0xff] %v215_v1 }
  0xbb   :  { %226 = vsyncpa [#allocation4], 1 }
  0xbc   :  { %227 = vsyncpa [#allocation6], 1 }

</bundles_post_ra>
